<compile_context>
chip_gen: v6e
topology: v6e:2x2x1
jax: 0.10.0
libtpu: 0.0.40
codegen_flags: <defaults>
</compile_context>

<pallas_src>
import functools

import numpy as np
import jax
import jax.numpy as jnp
from jax.experimental import pallas as pl
from jax.experimental.pallas import tpu as pltpu


def _round_up(n, m):
    return ((n + m - 1) // m) * m


# ---------------------------------------------------------------------------
# Fused kernel: all Linear(+ReLU) layers of the head in one launch.
# refs = (x_ref, w0_ref, b0_ref, ..., w{L-1}_ref, b{L-1}_ref, o_ref)
# ---------------------------------------------------------------------------
def _fused_head_kernel(*refs, num_layers: int):
    x_ref = refs[0]
    o_ref = refs[-1]
    wb_refs = refs[1:-1]

    x = x_ref[...]                                   # bf16 [TB, Dp_in]
    for i in range(num_layers):
        w = wb_refs[2 * i][...]                      # bf16 [Dp_in_i, Dp_out_i]
        b = wb_refs[2 * i + 1][...]                  # f32  [1, Dp_out_i]
        # MXU matmul with f32 accumulation; bias broadcast over batch rows.
        y = jnp.dot(x, w, preferred_element_type=jnp.float32) + b
        if i < num_layers - 1:
            x = jnp.maximum(y, 0.0).astype(jnp.bfloat16)   # ReLU (VPU, f32)
        else:
            o_ref[...] = y.astype(o_ref.dtype)       # single lane-dense store


# ---------------------------------------------------------------------------
# One-time weight repack (do this at init / cache it; NOT per forward call).
# ---------------------------------------------------------------------------
def pack_head_params(params):
    """params: list of (w [Dout, Din] f32, b [Dout] f32) in PyTorch layout.

    Returns a tuple of (w_t_padded bf16 [Dp_in, Dp_out], b_padded f32 [1, Dp_out]).
    """
    dims = [params[0][0].shape[1]] + [w.shape[0] for w, _ in params]
    pdims = [_round_up(d, 128) for d in dims]
    packed = []
    for i, (w, b) in enumerate(params):
        dout, din = w.shape
        wt = jnp.zeros((pdims[i], pdims[i + 1]), jnp.bfloat16)
        wt = wt.at[:din, :dout].set(jnp.asarray(w).T.astype(jnp.bfloat16))
        bp = jnp.zeros((1, pdims[i + 1]), jnp.float32)
        bp = bp.at[0, :dout].set(jnp.asarray(b, jnp.float32))
        packed.append((wt, bp))
    return tuple(packed)


# ---------------------------------------------------------------------------
# Forward pass (jitted so the activation pad/cast fuses with the call).
# ---------------------------------------------------------------------------
@functools.partial(jax.jit, static_argnames=("d_out", "out_dtype"))
def head_forward(x, packed_params, *, d_out, out_dtype=jnp.float32):
    """x: [B, Din] f32; packed_params: output of pack_head_params."""
    B, d_in = x.shape
    num_layers = len(packed_params)
    pd_in = packed_params[0][0].shape[0]
    pd_out = packed_params[-1][0].shape[1]
    pdims = [pd_in] + [wt.shape[1] for wt, _ in packed_params]

    # Batch tile: multiple of 16 (bf16 sublane packing), up to 512 rows so
    # per-grid-step overhead is amortized and weight reuse per step is high.
    TB = min(512, _round_up(B, 16))
    Bp = _round_up(B, TB)

    # Pad + cast activations inside the jit (fused by XLA; no extra host pass).
    xp = x.astype(jnp.bfloat16)
    if Bp != B or pd_in != d_in:
        xp = jnp.pad(xp, ((0, Bp - B), (0, pd_in - d_in)))

    grid = (Bp // TB,)

    in_specs = [pl.BlockSpec((TB, pd_in), lambda i: (i, 0))]
    flat_inputs = [xp]
    for wt, bp in packed_params:
        # Weights/biases are grid-invariant -> single-buffered (halves their
        # VMEM footprint vs. the default double-buffering).
        in_specs.append(pl.BlockSpec(wt.shape, lambda i: (0, 0),
                                     pipeline_mode=pl.Buffered(1)))
        in_specs.append(pl.BlockSpec(bp.shape, lambda i: (0, 0),
                                     pipeline_mode=pl.Buffered(1)))
        flat_inputs += [wt, bp]
    out_specs = pl.BlockSpec((TB, pd_out), lambda i: (i, 0))

    out_itemsize = np.dtype(out_dtype).itemsize
    flops = sum(2 * Bp * pdims[i] * pdims[i + 1] for i in range(num_layers))
    weight_bytes = sum(wt.size * 2 + bp.size * 4 for wt, bp in packed_params)
    bytes_accessed = xp.size * 2 + weight_bytes + Bp * pd_out * out_itemsize

    # VMEM budget from the actual resident buffers:
    #   weights/biases x1 (single-buffered) + x/out tiles x2 (double-buffered)
    #   + f32 intermediates, with headroom; clamped under v7x's 64 MiB.
    io_bytes = 2 * TB * pd_in * 2 + 2 * TB * pd_out * out_itemsize
    inter_bytes = sum(TB * d * 4 for d in pdims[1:])
    vmem_limit = int(1.5 * (weight_bytes + io_bytes + inter_bytes)) + (8 << 20)
    vmem_limit = max(32 << 20, min(vmem_limit, 48 << 20))

    kernel = functools.partial(_fused_head_kernel, num_layers=num_layers)

    out_padded = pl.pallas_call(
        kernel,
        out_shape=jax.ShapeDtypeStruct((Bp, pd_out), out_dtype),
        grid_spec=pltpu.PrefetchScalarGridSpec(
            num_scalar_prefetch=0,
            grid=grid,
            in_specs=in_specs,
            out_specs=out_specs,
        ),
        compiler_params=pltpu.CompilerParams(
            dimension_semantics=("parallel",),
            vmem_limit_bytes=vmem_limit,
        ),
        cost_estimate=pl.CostEstimate(
            flops=flops, transcendentals=0, bytes_accessed=bytes_accessed),
    )(*flat_inputs)

    return out_padded[:B, :d_out]


# ---------------------------------------------------------------------------
# Parameter init (nn.Linear layout, W: [out, in]) and pure-JAX reference.
# ---------------------------------------------------------------------------
def init_head_params(key, input_dim, proj_dims):
    if not isinstance(proj_dims, (list, tuple)):
        proj_dims = [proj_dims]
    params = []
    d_in = input_dim
    for d_out in proj_dims:
        key, kw, kb = jax.random.split(key, 3)
        bound = 1.0 / jnp.sqrt(d_in)  # PyTorch default uniform bound
        w = jax.random.uniform(kw, (d_out, d_in), jnp.float32, -bound, bound)
        b = jax.random.uniform(kb, (d_out,), jnp.float32, -bound, bound)
        params.append((w, b))
        d_in = d_out
    return params


def head_forward_ref(x, params):
    n = len(params)
    for i, (w, b) in enumerate(params):
        x = x @ w.T + b
        if i < n - 1:
            x = jnp.maximum(x, 0.0)
    return x


if __name__ == "__main__":
    key = jax.random.PRNGKey(0)
    key, kx = jax.random.split(key)

    batch = 8
    input_dim = 32
    proj_dims = [64, 16]

    x = jax.random.normal(kx, (batch, input_dim), jnp.float32)
    params = init_head_params(key, input_dim, proj_dims)

    # One-time repack (transpose / pad / bf16 cast), cached across calls.
    packed = pack_head_params(params)
    packed = jax.block_until_ready(packed)

    out = head_forward(x, packed, d_out=proj_dims[-1])
    out = jax.block_until_ready(out)

    ref = head_forward_ref(x, params)
    assert out.shape == (batch, proj_dims[-1])
    # bf16 MXU operands with f32 accumulation -> loosened tolerance vs f32 ref.
    assert jnp.allclose(out, ref, atol=2e-2, rtol=2e-2)

    print("KERNEL_OK")
</pallas_src>

<mosaic_0001>
module attributes {stable_mosaic.version = 11 : i64} {
  func.func @_fused_head_kernel(%arg0: i32, %arg1: memref<16x128xbf16, #tpu.memory_space<vmem>>, %arg2: memref<128x128xbf16, #tpu.memory_space<vmem>>, %arg3: memref<1x128xf32, #tpu.memory_space<vmem>>, %arg4: memref<128x128xbf16, #tpu.memory_space<vmem>>, %arg5: memref<1x128xf32, #tpu.memory_space<vmem>>, %arg6: memref<16x128xf32, #tpu.memory_space<vmem>>) attributes {dimension_semantics = [#tpu.dimension_semantics<parallel>], iteration_bounds = array<i64: 1>, scalar_prefetch = 0 : i64, scratch_operands = 0 : i64, tpu.core_type = #tpu.core_type<tc>, window_params = [{transform_indices = @transform_0, window_bounds = array<i64: 16, 128>}, {pipeline_mode = #tpu.pipeline_mode<synchronous>, transform_indices = @transform_1, window_bounds = array<i64: 128, 128>}, {pipeline_mode = #tpu.pipeline_mode<synchronous>, transform_indices = @transform_2, window_bounds = array<i64: 1, 128>}, {pipeline_mode = #tpu.pipeline_mode<synchronous>, transform_indices = @transform_3, window_bounds = array<i64: 128, 128>}, {pipeline_mode = #tpu.pipeline_mode<synchronous>, transform_indices = @transform_4, window_bounds = array<i64: 1, 128>}, {transform_indices = @transform_5, window_bounds = array<i64: 16, 128>}]} {
    %c0 = arith.constant 0 : index
    %c0_0 = arith.constant 0 : index
    %0 = vector.load %arg1[%c0, %c0_0] : memref<16x128xbf16, #tpu.memory_space<vmem>>, vector<16x128xbf16>
    %c0_1 = arith.constant 0 : index
    %c0_2 = arith.constant 0 : index
    %1 = vector.load %arg2[%c0_1, %c0_2] : memref<128x128xbf16, #tpu.memory_space<vmem>>, vector<128x128xbf16>
    %c0_3 = arith.constant 0 : index
    %c0_4 = arith.constant 0 : index
    %2 = vector.load %arg3[%c0_3, %c0_4] : memref<1x128xf32, #tpu.memory_space<vmem>>, vector<1x128xf32>
    %cst = arith.constant dense<0.000000e+00> : vector<16x128xf32>
    %3 = tpu.matmul %0, %1, %cst {dimension_numbers = #tpu.dot_dimension_numbers<[1], [0], [0], [1], [0, 0, 1, 1], [], []>} : vector<16x128xbf16>, vector<128x128xbf16>, vector<16x128xf32> -> vector<16x128xf32>
    %4 = vector.broadcast %2 : vector<1x128xf32> to vector<16x128xf32>
    %5 = arith.addf %3, %4 : vector<16x128xf32>
    %cst_5 = arith.constant 0.000000e+00 : f32
    %6 = vector.broadcast %cst_5 : f32 to vector<16x128xf32>
    %7 = arith.maximumf %5, %6 : vector<16x128xf32>
    %8 = arith.truncf %7 : vector<16x128xf32> to vector<16x128xbf16>
    %c0_6 = arith.constant 0 : index
    %c0_7 = arith.constant 0 : index
    %9 = vector.load %arg4[%c0_6, %c0_7] : memref<128x128xbf16, #tpu.memory_space<vmem>>, vector<128x128xbf16>
    %c0_8 = arith.constant 0 : index
    %c0_9 = arith.constant 0 : index
    %10 = vector.load %arg5[%c0_8, %c0_9] : memref<1x128xf32, #tpu.memory_space<vmem>>, vector<1x128xf32>
    %cst_10 = arith.constant dense<0.000000e+00> : vector<16x128xf32>
    %11 = tpu.matmul %8, %9, %cst_10 {dimension_numbers = #tpu.dot_dimension_numbers<[1], [0], [0], [1], [0, 0, 1, 1], [], []>} : vector<16x128xbf16>, vector<128x128xbf16>, vector<16x128xf32> -> vector<16x128xf32>
    %12 = vector.broadcast %10 : vector<1x128xf32> to vector<16x128xf32>
    %13 = arith.addf %11, %12 : vector<16x128xf32>
    %c0_11 = arith.constant 0 : index
    %c0_12 = arith.constant 0 : index
    %14 = vector.load %arg6[%c0_11, %c0_12] : memref<16x128xf32, #tpu.memory_space<vmem>>, vector<16x128xf32>
    tpu.vector_store %arg6[%c0_11, %c0_12], %13 {strides = array<i32>} : memref<16x128xf32, #tpu.memory_space<vmem>>, vector<16x128xf32>,
    return
  }
  func.func @transform_0(%arg0: i32) -> (i32, i32) {
    %c0_i32 = arith.constant 0 : i32
    %c0_i32_0 = arith.constant 0 : i32
    return %arg0, %c0_i32 : i32, i32
  }
  func.func @transform_1(%arg0: i32) -> (i32, i32) {
    %c0_i32 = arith.constant 0 : i32
    %c0_i32_0 = arith.constant 0 : i32
    %c0_i32_1 = arith.constant 0 : i32
    return %c0_i32, %c0_i32_0 : i32, i32
  }
  func.func @transform_2(%arg0: i32) -> (i32, i32) {
    %c0_i32 = arith.constant 0 : i32
    %c0_i32_0 = arith.constant 0 : i32
    %c0_i32_1 = arith.constant 0 : i32
    return %c0_i32, %c0_i32_0 : i32, i32
  }
  func.func @transform_3(%arg0: i32) -> (i32, i32) {
    %c0_i32 = arith.constant 0 : i32
    %c0_i32_0 = arith.constant 0 : i32
    %c0_i32_1 = arith.constant 0 : i32
    return %c0_i32, %c0_i32_0 : i32, i32
  }
  func.func @transform_4(%arg0: i32) -> (i32, i32) {
    %c0_i32 = arith.constant 0 : i32
    %c0_i32_0 = arith.constant 0 : i32
    %c0_i32_1 = arith.constant 0 : i32
    return %c0_i32, %c0_i32_0 : i32, i32
  }
  func.func @transform_5(%arg0: i32) -> (i32, i32) {
    %c0_i32 = arith.constant 0 : i32
    %c0_i32_0 = arith.constant 0 : i32
    return %arg0, %c0_i32 : i32, i32
  }
}

</mosaic_0001>

<bundles_post_ra>
// kernel: head_forward.1
= control target key start
LH: loop header
LB: loop body
LE: loop exit
PB: predicated region body
PF: predicated region fallthrough
CT: control target
= control target key end

     0   :  { %10 = vsyncpa [#allocation3], 0  ;;  %s493_s0 = inlined_call_operand.vmem [shape: bf16[16,128], index: 0, kind: input, shape index: {}]   ;;  %s494_s1 = inlined_call_operand.hbm [shape: bf16[128,128], index: 1, kind: input, shape index: {}]   ;;  %s495_s2 = inlined_call_operand.vmem [shape: f32[1,128], index: 2, kind: input, shape index: {}]   ;;  %s496_s3 = inlined_call_operand.hbm [shape: bf16[128,128], index: 3, kind: input, shape index: {}]   ;;  %s497_s4 = inlined_call_operand.vmem [shape: f32[1,128], index: 4, kind: input, shape index: {}]   ;;  %s498_s5 = inlined_call_operand.vmem [shape: f32[16,128], index: 5, kind: output, shape index: {}]  }
   0x1   :  { %11 = vsyncpa [#allocation5], 0  ;;  %s436_s18 = smov [#allocation2]  }
   0x2   :  { %s19_s19 = sshll.u32 %s436_s18, 4  ;;  %s20_s19 = int_to_ptr.vmem [resolvable:$true] %s19_s19 }
   0x3   :  { %s400_s20 = scalar_lea.vmem %s20_s19, 1024  ;;  %p405_p1 = scmp.lt.s32.totalorder %s20_s19, %s20_s19 }
   0x4   :  { %p401_p0 = scmp.ne.s32.totalorder %s20_s19, %s400_s20  ;;  %p406_p2 = scmp.lt.s32.totalorder %s400_s20, %s400_s20 }
   0x6   :  { %p407_p3 = por %p406_p2, %p405_p1 }
   0x8   :  { %p408_p4 = pnand %p407_p3, %p401_p0 }
   0xa   :  { %411 = shalt.err (!%p408_p4)
}
   0xb   :  { %s437_s21 = smov 64   ;;  %s438_s22 = smov 4  }
   0xc   :  { %25 = dma.hbm_to_vmem [thread:$0]  %s494_s1, 1024, %s20_s19, [#allocation3], %s437_s21, %s437_s21, %s438_s22  }
   0xd   :  { %s439_s25 = smov [#allocation4]  }
   0xe   :  { %s33_s26 = sshll.u32 %s439_s25, 4  ;;  %s34_s26 = int_to_ptr.vmem [resolvable:$true] %s33_s26 }
   0xf   :  { %s420_s27 = scalar_lea.vmem %s34_s26, 1024  ;;  %p425_p6 = scmp.lt.s32.totalorder %s34_s26, %s34_s26 }
  0x10   :  { %p421_p5 = scmp.ne.s32.totalorder %s34_s26, %s420_s27  ;;  %p426_p7 = scmp.lt.s32.totalorder %s420_s27, %s420_s27 }
  0x12   :  { %p427_p8 = por %p426_p7, %p425_p6 }
  0x14   :  { %p428_p9 = pnand %p427_p8, %p421_p5 }
  0x16   :  { %431 = shalt.err (!%p428_p9)
}
  0x17   :  { %39 = dma.hbm_to_vmem [thread:$0]  %s496_s3, 1024, %s34_s26, [#allocation5], %s437_s21, %s437_s21, %s438_s22  }
  0x18   :  { %432 = dma.done.wait [#allocation3], 1024  }
  0x19   :  { %433 = vsyncadd [#allocation3], 4294966272 }
  0x1a   :  { %434 = dma.done.wait [#allocation5], 1024  }
  0x1b   :  { %435 = vsyncadd [#allocation5], 4294966272  ;;  %v440_v0 = vmov 0.0   ;;  %vm441_vm0 = vmmov 0   ;;  %v375_v1 = vld [vmem:[#allocation2 + $0x38] sm:$0xff]   ;;  %v376_v2 = vld [vmem:[#allocation2 + $0x30] sm:$0xff]  }
  0x1c   :  { %329 = vmatprep.subr.bf16.mxu0 %v440_v0  ;;  %345 = vmatprep.mubr.msk.bf16.mxu0 %vm441_vm0, %v440_v0  ;;  %v377_v3 = vld [vmem:[#allocation2 + $0x28] sm:$0xff]   ;;  %v384_v4 = vld [vmem:[#allocation4 + $0x38] sm:$0xff]   ;;  %v378_v5 = vld [vmem:[#allocation2 + $0x20] sm:$0xff]  }
  0x1d   :  { %349 = vmatprep.subr.bf16.mxu1 %v440_v0  ;;  %365 = vmatprep.mubr.msk.bf16.mxu1 %vm441_vm0, %v440_v0  ;;  %v385_v6 = vld [vmem:[#allocation4 + $0x30] sm:$0xff]   ;;  %v379_v7 = vld [vmem:[#allocation2 + $0x18] sm:$0xff]   ;;  %v386_v8 = vld [vmem:[#allocation4 + $0x28] sm:$0xff]  }
  0x1e   :  { %330 = vmatpush3.bf16.msra.mxu0 %v375_v1  ;;  %350 = vmatpush3.bf16.msra.mxu1 %v384_v4  ;;  %v380_v9 = vld [vmem:[#allocation2 + $0x10] sm:$0xff]   ;;  %v387_v10 = vld [vmem:[#allocation4 + $0x20] sm:$0xff]   ;;  %v381_v11 = vld [vmem:[#allocation2 + $0x8] sm:$0xff]  }
  0x1f   :  { %331 = vmatprep.subr.bf16.mxu0 %v440_v0  ;;  %351 = vmatprep.subr.bf16.mxu1 %v440_v0  ;;  %v388_v12 = vld [vmem:[#allocation4 + $0x18] sm:$0xff]   ;;  %v382_v13 = vld [vmem:[#allocation2] sm:$0xff]   ;;  %v389_v15 = vld [vmem:[#allocation4 + $0x10] sm:$0xff]  }
  0x20   :  { %v383_v14 = vld [vmem:[%s493_s0] sm:$0xff]   ;;  %v390_v16 = vld [vmem:[#allocation4 + $0x8] sm:$0xff]  }
  0x21   :  { %v391_v17 = vld [vmem:[#allocation4] sm:$0xff]  }
  0x22   :  { %332 = vmatpush3.bf16.msra.mxu0 %v376_v2  ;;  %352 = vmatpush3.bf16.msra.mxu1 %v385_v6  ;;  %v292_v18 = vld [vmem:[%s495_s2] ss:$0 sm:$0xff] }
  0x23   :  { %333 = vmatprep.subr.bf16.mxu0 %v440_v0  ;;  %353 = vmatprep.subr.bf16.mxu1 %v440_v0  ;;  %v302_v28 = vld [vmem:[%s497_s4] ss:$0 sm:$0xff] }
  0x26   :  { %334 = vmatpush3.bf16.msra.mxu0 %v377_v3  ;;  %354 = vmatpush3.bf16.msra.mxu1 %v386_v8 }
  0x27   :  { %335 = vmatprep.subr.bf16.mxu0 %v440_v0  ;;  %355 = vmatprep.subr.bf16.mxu1 %v440_v0 }
  0x2a   :  { %336 = vmatpush3.bf16.msra.mxu0 %v378_v5  ;;  %356 = vmatpush3.bf16.msra.mxu1 %v387_v10 }
  0x2b   :  { %337 = vmatprep.subr.bf16.mxu0 %v440_v0  ;;  %357 = vmatprep.subr.bf16.mxu1 %v440_v0 }
  0x2e   :  { %338 = vmatpush3.bf16.msra.mxu0 %v379_v7  ;;  %358 = vmatpush3.bf16.msra.mxu1 %v388_v12 }
  0x2f   :  { %339 = vmatprep.subr.bf16.mxu0 %v440_v0  ;;  %359 = vmatprep.subr.bf16.mxu1 %v440_v0 }
  0x32   :  { %340 = vmatpush3.bf16.msra.mxu0 %v380_v9  ;;  %360 = vmatpush3.bf16.msra.mxu1 %v389_v15 }
  0x33   :  { %341 = vmatprep.subr.bf16.mxu0 %v440_v0  ;;  %361 = vmatprep.subr.bf16.mxu1 %v440_v0 }
  0x36   :  { %342 = vmatpush3.bf16.msra.mxu0 %v381_v11  ;;  %362 = vmatpush3.bf16.msra.mxu1 %v390_v16 }
  0x37   :  { %343 = vmatprep.subr.bf16.mxu0 %v440_v0  ;;  %363 = vmatprep.subr.bf16.mxu1 %v440_v0 }
  0x3a   :  { %344 = vmatpush3.bf16.msra.mxu0 %v382_v13  ;;  %364 = vmatpush3.bf16.msra.mxu1 %v391_v17 }
  0x3d   :  { %346 = vmatmul.mubr.bf16.vlgmr.msra.gmra.mxu0 %v383_v14 }
  0xfd   :  { %v162_v19 = vpop.f32.mrf.mxu0 }
  0xfe   :  { %v163_v21 = vadd.f32 %v292_v18, %v162_v19 }
  0xff   :  { %v347_v20 = vpop.f32.mrf.mxu0 }
 0x100   :  { %v169_v25 = vmax.f32 %v163_v21, 0.0 }
 0x101   :  { %v165_v22 = vpop.f32.mrf.mxu0 }
 0x102   :  { %v166_v23 = vadd.f32 %v292_v18, %v165_v22 }
 0x103   :  { %v348_v24 = vpop.f32.mrf.mxu0 }
 0x104   :  { %v170_v26 = vmax.f32 %v166_v23, 0.0 }
 0x106   :  { %v171_v27 = vpack.c.bf16 %v170_v26, %v169_v25 }
 0x108   :  { %366 = vmatmul.mubr.bf16.vlgmr.msra.gmra.mxu1 %v171_v27 }
 0x1c8   :  { %v277_v29 = vpop.f32.mrf.mxu1 }
 0x1c9   :  { %v278_v30 = vadd.f32 %v302_v28, %v277_v29 }
 0x1ca   :  { %v367_v31 = vpop.f32.mrf.mxu1 }
 0x1cb   :  { %284 = vst [vmem:[%s498_s5] sm:$0xff] %v278_v30 }
 0x1cc   :  { %v280_v32 = vpop.f32.mrf.mxu1 }
 0x1cd   :  { %v281_v33 = vadd.f32 %v302_v28, %v280_v32 }
 0x1ce   :  { %v368_v34 = vpop.f32.mrf.mxu1 }
 0x1cf   :  { %285 = vst [vmem:[%s498_s5 + $0x8] sm:$0xff] %v281_v33 }
 0x1d0   :  { %290 = vsyncpa [#allocation3], 1 }
 0x1d1   :  { %291 = vsyncpa [#allocation5], 1 }

</bundles_post_ra>
